<compile_context>
chip_gen: v5e
topology: v5e:2x2
jax: 0.10.0
libtpu: 0.0.40
codegen_flags: <defaults>
</compile_context>

<pallas_src>
import functools

import jax
import jax.numpy as jnp
from jax.experimental import pallas as pl
from jax.experimental.pallas import tpu as pltpu


def _round_up(x, m):
    return ((x + m - 1) // m) * m


def _mlp_kernel(*refs, num_layers, compute_dtype):
    """Fused Linear chain for one batch tile.

    refs = (x_ref, w1, b1, w2, b2, ..., wL, bL, o_ref)
    """
    x_ref = refs[0]
    o_ref = refs[1 + 2 * num_layers]
    h = x_ref[...]
    for l in range(num_layers):
        w_ref = refs[1 + 2 * l]
        b_ref = refs[2 + 2 * l]
        # MXU matmul with f32 accumulation, bias add in f32.
        h = jnp.dot(h.astype(compute_dtype), w_ref[...],
                    preferred_element_type=jnp.float32) + b_ref[...]
    o_ref[...] = h.astype(o_ref.dtype)


def mlp_forward(x, params, *, compute_dtype=jnp.bfloat16, tb=128):
    """x: [B, 2*input_size]. params: list of (W_t [d_in, d_out], b [1, d_out])."""
    B, in_dim = x.shape
    dims = [in_dim] + [w_t.shape[1] for w_t, _ in params]
    out_dim = dims[-1]
    num_layers = len(params)

    # Quantize operands; accumulation stays f32 on the MXU, bias stays f32.
    xq = x.astype(compute_dtype)
    flat_params = []
    for w_t, b in params:
        flat_params.append(w_t.astype(compute_dtype))
        flat_params.append(b.reshape(1, -1).astype(jnp.float32))

    # Batch tile: multiple of 8 sublanes, capped at `tb`; pad batch to the tile.
    tile = max(8, min(_round_up(tb, 8), _round_up(B, 8)))
    b_pad = _round_up(B, tile)
    if b_pad != B:
        xq = jnp.pad(xq, ((0, b_pad - B), (0, 0)))
    grid = (b_pad // tile,)

    itemsize = jnp.dtype(compute_dtype).itemsize
    layer_flops = sum(dims[i] * dims[i + 1] for i in range(num_layers))
    weight_bytes = layer_flops * itemsize
    bias_bytes = sum(dims[1:]) * 4
    cost = pl.CostEstimate(
        flops=2 * B * layer_flops,
        transcendentals=0,
        bytes_accessed=(B * in_dim * itemsize      # x
                        + weight_bytes             # resident weights
                        + bias_bytes               # resident biases
                        + B * out_dim * 4),        # output
    )

    # VMEM budget: resident weights/biases + double-buffered x/out tiles
    # + f32 activations for one tile. Clamp to a safe scoped-VMEM range.
    act_bytes = sum(tile * d * 4 for d in dims)
    vmem_needed = (weight_bytes + bias_bytes
                   + 2 * (tile * in_dim * itemsize + tile * out_dim * 4)
                   + act_bytes)
    vmem_limit = int(min(32 * 1024 * 1024,
                         max(4 * vmem_needed, 16 * 1024 * 1024)))

    # x is tiled over the batch; every weight/bias uses a constant index_map so
    # it is DMA'd once and stays VMEM-resident across all grid steps.
    in_specs = [pl.BlockSpec((tile, in_dim), lambda i: (i, 0))]
    for d_in, d_out in zip(dims[:-1], dims[1:]):
        in_specs.append(pl.BlockSpec((d_in, d_out), lambda i: (0, 0)))
        in_specs.append(pl.BlockSpec((1, d_out), lambda i: (0, 0)))

    kernel = functools.partial(_mlp_kernel,
                               num_layers=num_layers,
                               compute_dtype=compute_dtype)

    out = pl.pallas_call(
        kernel,
        out_shape=jax.ShapeDtypeStruct((b_pad, out_dim), jnp.float32),
        grid=grid,
        in_specs=in_specs,
        out_specs=pl.BlockSpec((tile, out_dim), lambda i: (i, 0)),
        compiler_params=pltpu.CompilerParams(
            dimension_semantics=("parallel",),
            vmem_limit_bytes=vmem_limit,
        ),
        cost_estimate=cost,
    )(xq, *flat_params)
    return out[:B]


def init_params(input_size, key):
    # Matches nn.init.normal_(weight, mean=0, std=1/(input_size+1)), bias=0.
    dims = [2 * input_size, 1024, 128, 64, 16, 1]
    std = 1.0 / (input_size + 1)
    params = []
    for i in range(len(dims) - 1):
        key, sub = jax.random.split(key)
        # PyTorch Linear weight is [out, in]; we store the transpose [in, out].
        w_t = std * jax.random.normal(sub, (dims[i], dims[i + 1]), dtype=jnp.float32)
        b = jnp.zeros((1, dims[i + 1]), dtype=jnp.float32)
        params.append((w_t, b))
    return params


def reference_forward(x, params):
    # Full-precision layer-by-layer chain (Dropout = identity in eval mode).
    h = x.astype(jnp.float32)
    for w_t, b in params:
        h = jnp.dot(h, w_t, precision=jax.lax.Precision.HIGHEST) + b.reshape(1, -1)
    return h


if __name__ == "__main__":
    input_size = 16
    key = jax.random.PRNGKey(0)
    key, xkey, xkey2 = jax.random.split(key, 3)
    params = init_params(input_size, key)

    # Small batch (single grid step).
    B = 8
    x = jax.random.normal(xkey, (B, 2 * input_size), dtype=jnp.float32)
    ref = reference_forward(x, params)

    out_bf16 = jax.block_until_ready(mlp_forward(x, params))
    assert out_bf16.shape == (B, 1), out_bf16.shape
    assert jnp.allclose(out_bf16, ref, atol=1e-2, rtol=5e-2), (out_bf16, ref)

    out_f32 = jax.block_until_ready(
        mlp_forward(x, params, compute_dtype=jnp.float32))
    assert jnp.allclose(out_f32, ref, atol=1e-3, rtol=1e-3), (out_f32, ref)

    # Multi-tile batch (exercises grid > 1, batch padding, resident weights).
    B2 = 40
    x2 = jax.random.normal(xkey2, (B2, 2 * input_size), dtype=jnp.float32)
    ref2 = reference_forward(x2, params)
    out2 = jax.block_until_ready(mlp_forward(x2, params, tb=16))
    assert out2.shape == (B2, 1), out2.shape
    assert jnp.allclose(out2, ref2, atol=1e-2, rtol=5e-2), (out2, ref2)

    print("KERNEL_OK")
</pallas_src>

<mosaic_0001>
module attributes {stable_mosaic.version = 11 : i64} {
  func.func @_mlp_kernel(%arg0: i32, %arg1: memref<8x32xbf16, #tpu.memory_space<vmem>>, %arg2: memref<32x1024xbf16, #tpu.memory_space<vmem>>, %arg3: memref<1x1024xf32, #tpu.memory_space<vmem>>, %arg4: memref<1024x128xbf16, #tpu.memory_space<vmem>>, %arg5: memref<1x128xf32, #tpu.memory_space<vmem>>, %arg6: memref<128x64xbf16, #tpu.memory_space<vmem>>, %arg7: memref<1x64xf32, #tpu.memory_space<vmem>>, %arg8: memref<64x16xbf16, #tpu.memory_space<vmem>>, %arg9: memref<1x16xf32, #tpu.memory_space<vmem>>, %arg10: memref<16x1xbf16, #tpu.memory_space<vmem>>, %arg11: memref<1x1xf32, #tpu.memory_space<vmem>>, %arg12: memref<8x1xf32, #tpu.memory_space<vmem>>) attributes {dimension_semantics = [#tpu.dimension_semantics<parallel>], iteration_bounds = array<i64: 1>, scalar_prefetch = 0 : i64, scratch_operands = 0 : i64, tpu.core_type = #tpu.core_type<tc>, window_params = [{transform_indices = @transform_0, window_bounds = array<i64: 8, 32>}, {pipeline_mode = #tpu.pipeline_mode<synchronous>, transform_indices = @transform_1, window_bounds = array<i64: 32, 1024>}, {pipeline_mode = #tpu.pipeline_mode<synchronous>, transform_indices = @transform_2, window_bounds = array<i64: 1, 1024>}, {pipeline_mode = #tpu.pipeline_mode<synchronous>, transform_indices = @transform_3, window_bounds = array<i64: 1024, 128>}, {pipeline_mode = #tpu.pipeline_mode<synchronous>, transform_indices = @transform_4, window_bounds = array<i64: 1, 128>}, {pipeline_mode = #tpu.pipeline_mode<synchronous>, transform_indices = @transform_5, window_bounds = array<i64: 128, 64>}, {pipeline_mode = #tpu.pipeline_mode<synchronous>, transform_indices = @transform_6, window_bounds = array<i64: 1, 64>}, {pipeline_mode = #tpu.pipeline_mode<synchronous>, transform_indices = @transform_7, window_bounds = array<i64: 64, 16>}, {pipeline_mode = #tpu.pipeline_mode<synchronous>, transform_indices = @transform_8, window_bounds = array<i64: 1, 16>}, {pipeline_mode = #tpu.pipeline_mode<synchronous>, transform_indices = @transform_9, window_bounds = array<i64: 16, 1>}, {pipeline_mode = #tpu.pipeline_mode<synchronous>, transform_indices = @transform_10, window_bounds = array<i64: 1, 1>}, {transform_indices = @transform_11, window_bounds = array<i64: 8, 1>}]} {
    %c0 = arith.constant 0 : index
    %c0_0 = arith.constant 0 : index
    %0 = vector.load %arg1[%c0, %c0_0] : memref<8x32xbf16, #tpu.memory_space<vmem>>, vector<8x32xbf16>
    %c0_1 = arith.constant 0 : index
    %c0_2 = arith.constant 0 : index
    %1 = vector.load %arg2[%c0_1, %c0_2] : memref<32x1024xbf16, #tpu.memory_space<vmem>>, vector<32x1024xbf16>
    %cst = arith.constant dense<0.000000e+00> : vector<8x1024xf32>
    %2 = tpu.matmul %0, %1, %cst {dimension_numbers = #tpu.dot_dimension_numbers<[1], [0], [0], [1], [0, 0, 1, 1], [], []>} : vector<8x32xbf16>, vector<32x1024xbf16>, vector<8x1024xf32> -> vector<8x1024xf32>
    %c0_3 = arith.constant 0 : index
    %c0_4 = arith.constant 0 : index
    %3 = vector.load %arg3[%c0_3, %c0_4] : memref<1x1024xf32, #tpu.memory_space<vmem>>, vector<1x1024xf32>
    %4 = vector.broadcast %3 : vector<1x1024xf32> to vector<8x1024xf32>
    %5 = arith.addf %2, %4 : vector<8x1024xf32>
    %6 = arith.truncf %5 : vector<8x1024xf32> to vector<8x1024xbf16>
    %c0_5 = arith.constant 0 : index
    %c0_6 = arith.constant 0 : index
    %7 = vector.load %arg4[%c0_5, %c0_6] : memref<1024x128xbf16, #tpu.memory_space<vmem>>, vector<1024x128xbf16>
    %cst_7 = arith.constant dense<0.000000e+00> : vector<8x128xf32>
    %8 = tpu.matmul %6, %7, %cst_7 {dimension_numbers = #tpu.dot_dimension_numbers<[1], [0], [0], [1], [0, 0, 1, 1], [], []>} : vector<8x1024xbf16>, vector<1024x128xbf16>, vector<8x128xf32> -> vector<8x128xf32>
    %c0_8 = arith.constant 0 : index
    %c0_9 = arith.constant 0 : index
    %9 = vector.load %arg5[%c0_8, %c0_9] : memref<1x128xf32, #tpu.memory_space<vmem>>, vector<1x128xf32>
    %10 = vector.broadcast %9 : vector<1x128xf32> to vector<8x128xf32>
    %11 = arith.addf %8, %10 : vector<8x128xf32>
    %12 = arith.truncf %11 : vector<8x128xf32> to vector<8x128xbf16>
    %c0_10 = arith.constant 0 : index
    %c0_11 = arith.constant 0 : index
    %13 = vector.load %arg6[%c0_10, %c0_11] : memref<128x64xbf16, #tpu.memory_space<vmem>>, vector<128x64xbf16>
    %cst_12 = arith.constant dense<0.000000e+00> : vector<8x64xf32>
    %14 = tpu.matmul %12, %13, %cst_12 {dimension_numbers = #tpu.dot_dimension_numbers<[1], [0], [0], [1], [0, 0, 1, 1], [], []>} : vector<8x128xbf16>, vector<128x64xbf16>, vector<8x64xf32> -> vector<8x64xf32>
    %c0_13 = arith.constant 0 : index
    %c0_14 = arith.constant 0 : index
    %15 = vector.load %arg7[%c0_13, %c0_14] : memref<1x64xf32, #tpu.memory_space<vmem>>, vector<1x64xf32>
    %16 = vector.broadcast %15 : vector<1x64xf32> to vector<8x64xf32>
    %17 = arith.addf %14, %16 : vector<8x64xf32>
    %18 = arith.truncf %17 : vector<8x64xf32> to vector<8x64xbf16>
    %c0_15 = arith.constant 0 : index
    %c0_16 = arith.constant 0 : index
    %19 = vector.load %arg8[%c0_15, %c0_16] : memref<64x16xbf16, #tpu.memory_space<vmem>>, vector<64x16xbf16>
    %cst_17 = arith.constant dense<0.000000e+00> : vector<8x16xf32>
    %20 = tpu.matmul %18, %19, %cst_17 {dimension_numbers = #tpu.dot_dimension_numbers<[1], [0], [0], [1], [0, 0, 1, 1], [], []>} : vector<8x64xbf16>, vector<64x16xbf16>, vector<8x16xf32> -> vector<8x16xf32>
    %c0_18 = arith.constant 0 : index
    %c0_19 = arith.constant 0 : index
    %21 = vector.load %arg9[%c0_18, %c0_19] : memref<1x16xf32, #tpu.memory_space<vmem>>, vector<1x16xf32>
    %22 = vector.broadcast %21 : vector<1x16xf32> to vector<8x16xf32>
    %23 = arith.addf %20, %22 : vector<8x16xf32>
    %24 = arith.truncf %23 : vector<8x16xf32> to vector<8x16xbf16>
    %c0_20 = arith.constant 0 : index
    %c0_21 = arith.constant 0 : index
    %25 = vector.load %arg10[%c0_20, %c0_21] : memref<16x1xbf16, #tpu.memory_space<vmem>>, vector<16x1xbf16>
    %cst_22 = arith.constant dense<0.000000e+00> : vector<8x1xf32>
    %26 = tpu.matmul %24, %25, %cst_22 {dimension_numbers = #tpu.dot_dimension_numbers<[1], [0], [0], [1], [0, 0, 1, 1], [], []>} : vector<8x16xbf16>, vector<16x1xbf16>, vector<8x1xf32> -> vector<8x1xf32>
    %c0_23 = arith.constant 0 : index
    %c0_24 = arith.constant 0 : index
    %27 = vector.load %arg11[%c0_23, %c0_24] : memref<1x1xf32, #tpu.memory_space<vmem>>, vector<1x1xf32>
    %28 = vector.broadcast %27 : vector<1x1xf32> to vector<8x1xf32>
    %29 = arith.addf %26, %28 : vector<8x1xf32>
    %c0_25 = arith.constant 0 : index
    %c0_26 = arith.constant 0 : index
    %30 = vector.load %arg12[%c0_25, %c0_26] : memref<8x1xf32, #tpu.memory_space<vmem>>, vector<8x1xf32>
    tpu.vector_store %arg12[%c0_25, %c0_26], %29 {strides = array<i32>} : memref<8x1xf32, #tpu.memory_space<vmem>>, vector<8x1xf32>,
    return
  }
  func.func @transform_0(%arg0: i32) -> (i32, i32) {
    %c0_i32 = arith.constant 0 : i32
    %c0_i32_0 = arith.constant 0 : i32
    return %arg0, %c0_i32 : i32, i32
  }
  func.func @transform_1(%arg0: i32) -> (i32, i32) {
    %c0_i32 = arith.constant 0 : i32
    %c0_i32_0 = arith.constant 0 : i32
    %c0_i32_1 = arith.constant 0 : i32
    return %c0_i32, %c0_i32_0 : i32, i32
  }
  func.func @transform_2(%arg0: i32) -> (i32, i32) {
    %c0_i32 = arith.constant 0 : i32
    %c0_i32_0 = arith.constant 0 : i32
    %c0_i32_1 = arith.constant 0 : i32
    return %c0_i32, %c0_i32_0 : i32, i32
  }
  func.func @transform_3(%arg0: i32) -> (i32, i32) {
    %c0_i32 = arith.constant 0 : i32
    %c0_i32_0 = arith.constant 0 : i32
    %c0_i32_1 = arith.constant 0 : i32
    return %c0_i32, %c0_i32_0 : i32, i32
  }
  func.func @transform_4(%arg0: i32) -> (i32, i32) {
    %c0_i32 = arith.constant 0 : i32
    %c0_i32_0 = arith.constant 0 : i32
    %c0_i32_1 = arith.constant 0 : i32
    return %c0_i32, %c0_i32_0 : i32, i32
  }
  func.func @transform_5(%arg0: i32) -> (i32, i32) {
    %c0_i32 = arith.constant 0 : i32
    %c0_i32_0 = arith.constant 0 : i32
    %c0_i32_1 = arith.constant 0 : i32
    return %c0_i32, %c0_i32_0 : i32, i32
  }
  func.func @transform_6(%arg0: i32) -> (i32, i32) {
    %c0_i32 = arith.constant 0 : i32
    %c0_i32_0 = arith.constant 0 : i32
    %c0_i32_1 = arith.constant 0 : i32
    return %c0_i32, %c0_i32_0 : i32, i32
  }
  func.func @transform_7(%arg0: i32) -> (i32, i32) {
    %c0_i32 = arith.constant 0 : i32
    %c0_i32_0 = arith.constant 0 : i32
    %c0_i32_1 = arith.constant 0 : i32
    return %c0_i32, %c0_i32_0 : i32, i32
  }
  func.func @transform_8(%arg0: i32) -> (i32, i32) {
    %c0_i32 = arith.constant 0 : i32
    %c0_i32_0 = arith.constant 0 : i32
    %c0_i32_1 = arith.constant 0 : i32
    return %c0_i32, %c0_i32_0 : i32, i32
  }
  func.func @transform_9(%arg0: i32) -> (i32, i32) {
    %c0_i32 = arith.constant 0 : i32
    %c0_i32_0 = arith.constant 0 : i32
    %c0_i32_1 = arith.constant 0 : i32
    return %c0_i32, %c0_i32_0 : i32, i32
  }
  func.func @transform_10(%arg0: i32) -> (i32, i32) {
    %c0_i32 = arith.constant 0 : i32
    %c0_i32_0 = arith.constant 0 : i32
    %c0_i32_1 = arith.constant 0 : i32
    return %c0_i32, %c0_i32_0 : i32, i32
  }
  func.func @transform_11(%arg0: i32) -> (i32, i32) {
    %c0_i32 = arith.constant 0 : i32
    %c0_i32_0 = arith.constant 0 : i32
    return %arg0, %c0_i32 : i32, i32
  }
}

</mosaic_0001>

<bundles_post_ra>
// kernel: tpu_custom_call.1
= control target key start
LH: loop header
LB: loop body
LE: loop exit
PB: predicated region body
PF: predicated region fallthrough
CT: control target
= control target key end

     0   :  { %s1829_s0 = inlined_call_operand.vmem [shape: bf16[8,32], index: 0, kind: input, shape index: {}]   ;;  %s1830_s1 = inlined_call_operand.vmem [shape: bf16[32,1024], index: 1, kind: input, shape index: {}]   ;;  %s1831_s2 = inlined_call_operand.vmem [shape: f32[1,1024], index: 2, kind: input, shape index: {}]   ;;  %s1832_s3 = inlined_call_operand.hbm [shape: bf16[1024,128], index: 3, kind: input, shape index: {}]   ;;  %s1833_s4 = inlined_call_operand.vmem [shape: f32[1,128], index: 4, kind: input, shape index: {}]   ;;  %s1834_s5 = inlined_call_operand.vmem [shape: bf16[128,64], index: 5, kind: input, shape index: {}]   ;;  %s1835_s6 = inlined_call_operand.vmem [shape: f32[1,64], index: 6, kind: input, shape index: {}]   ;;  %s1836_s7 = inlined_call_operand.vmem [shape: bf16[64,16], index: 7, kind: input, shape index: {}]   ;;  %s1837_s8 = inlined_call_operand.vmem [shape: f32[1,16], index: 8, kind: input, shape index: {}]   ;;  %s1838_s9 = inlined_call_operand.vmem [shape: bf16[16,1], index: 9, kind: input, shape index: {}]   ;;  %s1839_s10 = inlined_call_operand.<no memory space> [shape: f32[1,1], index: 10, kind: input, shape index: {}]   ;;  %s1840_s11 = inlined_call_operand.vmem [shape: f32[8,1], index: 11, kind: output, shape index: {}]  }
   0x1   :  { %v16_v0 = vstv %s1839_s10 }
   0x2   :  { %17 = vst [vmem:[#allocation2] sm:$0x1] %v16_v0 }
   0x3   :  { %18 = vsyncpa [#allocation4], 0  ;;  %s29_s21 = sshll.u32 %s1832_s3, 4  ;;  %s1589_s22 = smov [#allocation3]   ;;  %s30_s21 = int_to_ptr.hbm [resolvable:$true] %s29_s21 }
   0x4   :  { %s31_s23 = sshll.u32 %s1589_s22, 4  ;;  %s1590_s24 = smov 64   ;;  %s32_s23 = int_to_ptr.vmem [resolvable:$true] %s31_s23 }
   0x5   :  { %s1591_s25 = smov 4  }
   0x6   :  { %37 = dma.hbm_to_vmem [thread:$0]  %s30_s21, 8192, %s32_s23, [#allocation4], %s1590_s24, %s1590_s24, %s1591_s25  }
   0x7   :  { %1587 = dma.done.wait [#allocation4], 8192  }
   0x8   :  { %1588 = vsyncadd [#allocation4], 4294959104  ;;  %v1115_v1 = vld [vmem:[%s1830_s1 + $0x40] sm:$0xf]  ;;  %v1123_v3 = vld [vmem:[%s1830_s1 + $0x48] sm:$0xf] }
   0x9   :  { %v1475_v2 = vld [vmem:[%s1830_s1 + $0x5c] sm:$0xf0]  ;;  %v1476_v5 = vld [vmem:[%s1830_s1 + $0x64] sm:$0xf0]  ;;  %vm172_vm0 = vcmask 261120   ;;  %v1501_v51 = vld [vmem:[#allocation3 + $0xb0] sm:$0xff] }
   0xa   :  { %v1116_v4 = vor.u32 %v1475_v2, %v1115_v1  ;;  %v1083_v6 = vld [vmem:[%s1830_s1] sm:$0xf]  ;;  %v1124_v8 = vor.u32 %v1476_v5, %v1123_v3  ;;  %v1091_v9 = vld [vmem:[%s1830_s1 + $0x8] sm:$0xf]  ;;  %v1472_v12 = vld [vmem:[%s1830_s1 + $0x4c] sm:$0xf] }
   0xb   :  { %v1467_v7 = vld [vmem:[%s1830_s1 + $0x1c] sm:$0xf0]  ;;  %v1468_v10 = vld [vmem:[%s1830_s1 + $0x24] sm:$0xf0]  ;;  %v1125_v13 = vld [vmem:[%s1830_s1 + $0x68] sm:$0xf0] }
   0xc   :  { %182 = vmatpush.bf16.msra.mxu3 %v1116_v4  ;;  %v1084_v11 = vor.u32 %v1467_v7, %v1083_v6  ;;  %v1471_v14 = vld [vmem:[%s1830_s1 + $0x44] sm:$0xf]  ;;  %208 = vmatpush.bf16.msra.mxu2 %v1124_v8  ;;  %v1092_v15 = vor.u32 %v1468_v10, %v1091_v9  ;;  %v1128_v16 = vor.u32 %v1472_v12, %v1125_v13  ;;  %v1703_v20 = vld [vmem:[%s1829_s0] sm:$0xf]  ;;  %v1464_v22 = vld [vmem:[%s1830_s1 + $0xc] sm:$0xf] }
   0xd   :  { %v1117_v17 = vld [vmem:[%s1830_s1 + $0x60] sm:$0xf0]  ;;  %v1093_v23 = vld [vmem:[%s1830_s1 + $0x28] sm:$0xf0]  ;;  %v1139_v24 = vld [vmem:[%s1830_s1 + $0x58] sm:$0xf] }
   0xe   :  { %v1463_v18 = vld [vmem:[%s1830_s1 + $0x4] sm:$0xf]  ;;  %v1120_v21 = vor.u32 %v1471_v14, %v1117_v17  ;;  %v1478_v25 = vld [vmem:[%s1830_s1 + $0x74] sm:$0xf0]  ;;  %v1474_v26 = vld [vmem:[%s1830_s1 + $0x5c] sm:$0xf]  ;;  %v1096_v33 = vor.u32 %v1464_v22, %v1093_v23 }
   0xf   :  { %v1085_v19 = vld [vmem:[%s1830_s1 + $0x20] sm:$0xf0]  ;;  %v1141_v27 = vld [vmem:[%s1830_s1 + $0x78] sm:$0xf0]  ;;  %v1140_v29 = vor.u32 %v1478_v25, %v1139_v24  ;;  %v1107_v30 = vld [vmem:[%s1830_s1 + $0x18] sm:$0xf] }
  0x10   :  { %183 = vmatpush.bf16.msra.mxu3 %v1084_v11  ;;  %195 = vmatpush.bf16.msra.mxu1 %v1120_v21  ;;  %v1088_v28 = vor.u32 %v1463_v18, %v1085_v19  ;;  %v1470_v31 = vld [vmem:[%s1830_s1 + $0x34] sm:$0xf0]  ;;  %v1131_v32 = vld [vmem:[%s1830_s1 + $0x50] sm:$0xf]  ;;  %v1473_v35 = vld [vmem:[%s1830_s1 + $0x54] sm:$0xf]  ;;  %v1144_v37 = vor.u32 %v1474_v26, %v1141_v27 }
  0x11   :  { %209 = vmatpush.bf16.msra.mxu2 %v1092_v15  ;;  %v1477_v34 = vld [vmem:[%s1830_s1 + $0x6c] sm:$0xf0]  ;;  %v1133_v36 = vld [vmem:[%s1830_s1 + $0x70] sm:$0xf0]  ;;  %v1108_v38 = vor.u32 %v1470_v31, %v1107_v30  ;;  %v1466_v41 = vld [vmem:[%s1830_s1 + $0x1c] sm:$0xf] }
  0x12   :  { %v1132_v39 = vor.u32 %v1477_v34, %v1131_v32  ;;  %v1099_v40 = vld [vmem:[%s1830_s1 + $0x10] sm:$0xf]  ;;  %v1109_v42 = vld [vmem:[%s1830_s1 + $0x38] sm:$0xf0]  ;;  %v1136_v44 = vor.u32 %v1473_v35, %v1133_v36  ;;  %v1465_v47 = vld [vmem:[%s1830_s1 + $0x14] sm:$0xf] }
  0x13   :  { %1145 = vmatmul.msk.bf16.vlgmr.msra.gmra.mxu3 %vm172_vm0, %v1703_v20  ;;  %v1469_v43 = vld [vmem:[%s1830_s1 + $0x2c] sm:$0xf0]  ;;  %v1502_v45 = vld [vmem:[#allocation3 + $0xb8] sm:$0xff]  ;;  %v1101_v48 = vld [vmem:[%s1830_s1 + $0x30] sm:$0xf0]  ;;  %v1112_v49 = vor.u32 %v1466_v41, %v1109_v42  ;;  %vm1027_vm1 = vcmask 523264  }
  0x14   :  { %221 = vmatpush.bf16.msrb.mxu3 %v1128_v16  ;;  %1147 = vmatmul.msk.bf16.vlgmr.msra.gmra.mxu2 %vm172_vm0, %v1703_v20  ;;  %v1100_v46 = vor.u32 %v1469_v43, %v1099_v40  ;;  %v1486_v50 = vld [vmem:[#allocation3 + $0x38] sm:$0xff]  ;;  %v1104_v52 = vor.u32 %v1465_v47, %v1101_v48  ;;  %v1485_v54 = vld [vmem:[#allocation3 + $0x30] sm:$0xff]  ;;  %v1500_v55 = vld [vmem:[#allocation3 + $0xa8] sm:$0xff]  ;;  %vm1057_vm2 = vcmask 130048   ;;  %vm1074_vm3 = vcmask 7168  }
  0x15   :  { %260 = vmatpush.bf16.msrb.mxu2 %v1140_v29  ;;  %196 = vmatpush.bf16.msra.mxu1 %v1088_v28  ;;  %v1494_v53 = vld [vmem:[#allocation3 + $0x78] sm:$0xff]  ;;  %v1493_v56 = vld [vmem:[#allocation3 + $0x70] sm:$0xff]  ;;  %v1484_v57 = vld [vmem:[#allocation3 + $0x28] sm:$0xff] }
  0x16   :  { %234 = vmatpush.bf16.msra.mxu0 %v1132_v39  ;;  %v1499_v58 = vld [vmem:[#allocation3 + $0xa0] sm:$0xff]  ;;  %v1510_v59 = vld [vmem:[#allocation3 + $0xf8] sm:$0xff]  ;;  %v1492_v60 = vld [vmem:[#allocation3 + $0x68] sm:$0xff] }
  0x17   :  { %v1483_v61 = vld [vmem:[#allocation3 + $0x20] sm:$0xff]  ;;  %v1498_v62 = vld [vmem:[#allocation3 + $0x98] sm:$0xff]  ;;  %v1509_v63 = vld [vmem:[#allocation3 + $0xf0] sm:$0xff] }
  0x18   :  { %222 = vmatpush.bf16.msrb.mxu3 %v1096_v33  ;;  %1146 = vmatmul.msk.bf16.vlgmr.msra.gmra.mxu1 %vm172_vm0, %v1703_v20  ;;  %v1491_v0 = vld [vmem:[#allocation3 + $0x60] sm:$0xff]  ;;  %v1482_v1 = vld [vmem:[#allocation3 + $0x18] sm:$0xff]  ;;  %v1497_v2 = vld [vmem:[#allocation3 + $0x90] sm:$0xff] }
  0x19   :  { %261 = vmatpush.bf16.msrb.mxu2 %v1108_v38  ;;  %247 = vmatpush.bf16.msrb.mxu1 %v1136_v44  ;;  %v1508_v3 = vld [vmem:[#allocation3 + $0xe8] sm:$0xff]  ;;  %v1490_v4 = vld [vmem:[#allocation3 + $0x58] sm:$0xff]  ;;  %v1481_v5 = vld [vmem:[#allocation3 + $0x10] sm:$0xff] }
  0x1a   :  { %235 = vmatpush.bf16.msra.mxu0 %v1100_v46  ;;  %v1496_v6 = vld [vmem:[#allocation3 + $0x88] sm:$0xff]  ;;  %v1507_v7 = vld [vmem:[#allocation3 + $0xe0] sm:$0xff]  ;;  %v1489_v8 = vld [vmem:[#allocation3 + $0x50] sm:$0xff] }
  0x1b   :  { %v1480_v9 = vld [vmem:[#allocation3 + $0x8] sm:$0xff]  ;;  %v1495_v10 = vld [vmem:[#allocation3 + $0x80] sm:$0xff]  ;;  %v1506_v11 = vld [vmem:[#allocation3 + $0xd8] sm:$0xff] }
  0x1c   :  { %273 = vmatpush.bf16.msra.mxu3 %v1144_v37  ;;  %v1534_v12 = vld [vmem:[#allocation3 + $0x1b8] sm:$0xff]  ;;  %v1488_v13 = vld [vmem:[#allocation3 + $0x48] sm:$0xff]  ;;  %v1479_v14 = vld [vmem:[#allocation3] sm:$0xff] }
  0x1d   :  { %830 = vmatpush.bf16.msra.mxu2 %v1502_v45  ;;  %248 = vmatpush.bf16.msrb.mxu1 %v1104_v52  ;;  %v1518_v15 = vld [vmem:[#allocation3 + $0x138] sm:$0xff]  ;;  %v1505_v16 = vld [vmem:[#allocation3 + $0xd0] sm:$0xff]  ;;  %v1487_v17 = vld [vmem:[#allocation3 + $0x40] sm:$0xff] }
  0x1e   :  { %804 = vmatpush.bf16.msrb.mxu0 %v1486_v50  ;;  %v1526_v18 = vld [vmem:[#allocation3 + $0x178] sm:$0xff]  ;;  %v1533_v19 = vld [vmem:[#allocation3 + $0x1b0] sm:$0xff]  ;;  %v1504_v21 = vld [vmem:[#allocation3 + $0xc8] sm:$0xff] }
  0x1f   :  { %1149 = vmatmul.msk.bf16.vlgmr.msra.gmra.mxu0 %vm172_vm0, %v1703_v20  ;;  %v1517_v22 = vld [vmem:[#allocation3 + $0x130] sm:$0xff]  ;;  %v1532_v23 = vld [vmem:[#allocation3 + $0x1a8] sm:$0xff]  ;;  %v1503_v24 = vld [vmem:[#allocation3 + $0xc0] sm:$0xff] }
  0x20   :  { %274 = vmatpush.bf16.msra.mxu3 %v1112_v49  ;;  %v1516_v25 = vld [vmem:[#allocation3 + $0x128] sm:$0xff]  ;;  %v1542_v26 = vld [vmem:[#allocation3 + $0x1f8] sm:$0xff]  ;;  %v1531_v28 = vld [vmem:[#allocation3 + $0x1a0] sm:$0xff] }
  0x21   :  { %831 = vmatpush.bf16.msra.mxu2 %v1501_v51  ;;  %817 = vmatpush.bf16.msra.mxu1 %v1494_v53  ;;  %v1524_v27 = vld [vmem:[#allocation3 + $0x168] sm:$0xff]  ;;  %v1515_v29 = vld [vmem:[#allocation3 + $0x120] sm:$0xff]  ;;  %v1541_v30 = vld [vmem:[#allocation3 + $0x1f0] sm:$0xff] }
  0x22   :  { %805 = vmatpush.bf16.msrb.mxu0 %v1485_v54  ;;  %v1523_v31 = vld [vmem:[#allocation3 + $0x160] sm:$0xff]  ;;  %v1530_v32 = vld [vmem:[#allocation3 + $0x198] sm:$0xff]  ;;  %v1540_v34 = vld [vmem:[#allocation3 + $0x1e8] sm:$0xff] }
  0x23   :  { %1148 = vmatmul.msk.bf16.vlgmr.msrb.gmra.mxu3 %vm172_vm0, %v1703_v20  ;;  %v1514_v33 = vld [vmem:[#allocation3 + $0x118] sm:$0xff]  ;;  %v1529_v36 = vld [vmem:[#allocation3 + $0x190] sm:$0xff]  ;;  %v1539_v38 = vld [vmem:[#allocation3 + $0x1e0] sm:$0xff] }
  0x24   :  { %1151 = vmatmul.msk.bf16.vlgmr.msrb.gmra.mxu2 %vm172_vm0, %v1703_v20  ;;  %843 = vmatpush.bf16.msrb.mxu3 %v1510_v59  ;;  %v1522_v35 = vld [vmem:[#allocation3 + $0x158] sm:$0xff]  ;;  %v1513_v37 = vld [vmem:[#allocation3 + $0x110] sm:$0xff]  ;;  %v1528_v40 = vld [vmem:[#allocation3 + $0x188] sm:$0xff] }
  0x25   :  { %832 = vmatpush.bf16.msra.mxu2 %v1500_v55  ;;  %818 = vmatpush.bf16.msra.mxu1 %v1493_v56  ;;  %v1521_v39 = vld [vmem:[#allocation3 + $0x150] sm:$0xff]  ;;  %v1512_v41 = vld [vmem:[#allocation3 + $0x108] sm:$0xff]  ;;  %v1538_v42 = vld [vmem:[#allocation3 + $0x1d8] sm:$0xff] }
  0x26   :  { %806 = vmatpush.bf16.msrb.mxu0 %v1484_v57  ;;  %v1520_v43 = vld [vmem:[#allocation3 + $0x148] sm:$0xff]  ;;  %v1527_v44 = vld [vmem:[#allocation3 + $0x180] sm:$0xff]  ;;  %v1537_v46 = vld [vmem:[#allocation3 + $0x1d0] sm:$0xff] }
  0x27   :  { %v1511_v45 = vld [vmem:[#allocation3 + $0x100] sm:$0xff]  ;;  %v1536_v50 = vld [vmem:[#allocation3 + $0x1c8] sm:$0xff] }
  0x28   :  { %1150 = vmatmul.msk.bf16.vlgmr.msrb.gmra.mxu1 %vm172_vm0, %v1703_v20  ;;  %844 = vmatpush.bf16.msrb.mxu3 %v1509_v63  ;;  %v1519_v47 = vld [vmem:[#allocation3 + $0x140] sm:$0xff] }
  0x29   :  { %833 = vmatpush.bf16.msra.mxu2 %v1499_v58  ;;  %819 = vmatpush.bf16.msra.mxu1 %v1492_v60  ;;  %v74_v48 = vld [vmem:[%s1831_s2] sm:$0xff] }
  0x2a   :  { %807 = vmatpush.bf16.msrb.mxu0 %v1483_v61  ;;  %v77_v49 = vperm.slane %v74_v48, 1  ;;  %v76_v51 = vperm.slane %v74_v48, 0  ;;  %v78_v52 = vperm.slane %v74_v48, 2  ;;  %v1535_v59 = vld [vmem:[#allocation3 + $0x1c0] sm:$0xff] }
  0x2c   :  { %845 = vmatpush.bf16.msrb.mxu3 %v1508_v3  ;;  %v80_v3 = vperm.slane %v74_v48, 4 }
  0x2d   :  { %834 = vmatpush.bf16.msra.mxu2 %v1498_v62  ;;  %820 = vmatpush.bf16.msra.mxu1 %v1491_v0 }
  0x2e   :  { %808 = vmatpush.bf16.msrb.mxu0 %v1482_v1 }
  0x30   :  { %846 = vmatpush.bf16.msrb.mxu3 %v1507_v7 }
  0x31   :  { %835 = vmatpush.bf16.msra.mxu2 %v1497_v2  ;;  %821 = vmatpush.bf16.msra.mxu1 %v1490_v4  ;;  %v81_v4 = vperm.slane %v74_v48, 5 }
  0x32   :  { %809 = vmatpush.bf16.msrb.mxu0 %v1481_v5 }
  0x33   :  { %1152 = vmatmul.msk.bf16.vlgmr.msra.gmra.mxu3 %vm172_vm0, %v1703_v20  ;;  %v1525_v20 = vld [vmem:[#allocation3 + $0x170] sm:$0xff] }
  0x34   :  { %847 = vmatpush.bf16.msrb.mxu3 %v1506_v11 }
  0x35   :  { %836 = vmatpush.bf16.msra.mxu2 %v1496_v6  ;;  %822 = vmatpush.bf16.msra.mxu1 %v1489_v8  ;;  %v79_v6 = vperm.slane %v74_v48, 3  ;;  %v82_v8 = vperm.slane %v74_v48, 6 }
  0x36   :  { %810 = vmatpush.bf16.msrb.mxu0 %v1480_v9 }
  0x38   :  { %848 = vmatpush.bf16.msrb.mxu3 %v1505_v16 }
  0x39   :  { %837 = vmatpush.bf16.msra.mxu2 %v1495_v10  ;;  %823 = vmatpush.bf16.msra.mxu1 %v1488_v13 }
  0x3a   :  { %811 = vmatpush.bf16.msrb.mxu0 %v1479_v14 }
  0x3c   :  { %849 = vmatpush.bf16.msrb.mxu3 %v1504_v21 }
  0x3d   :  { %882 = vmatpush.bf16.msrb.mxu2 %v1534_v12  ;;  %824 = vmatpush.bf16.msra.mxu1 %v1487_v17 }
  0x3e   :  { %856 = vmatpush.bf16.msra.mxu0 %v1518_v15 }
  0x40   :  { %850 = vmatpush.bf16.msrb.mxu3 %v1503_v24 }
  0x41   :  { %869 = vmatpush.bf16.msrb.mxu1 %v1526_v18  ;;  %883 = vmatpush.bf16.msrb.mxu2 %v1533_v19 }
  0x42   :  { %857 = vmatpush.bf16.msra.mxu0 %v1517_v22 }
  0x44   :  { %895 = vmatpush.bf16.msra.mxu3 %v1542_v26 }
  0x45   :  { %870 = vmatpush.bf16.msrb.mxu1 %v1525_v20  ;;  %884 = vmatpush.bf16.msrb.mxu2 %v1532_v23  ;;  %v83_v20 = vperm.slane %v74_v48, 7 }
  0x46   :  { %858 = vmatpush.bf16.msra.mxu0 %v1516_v25 }
  0x48   :  { %896 = vmatpush.bf16.msra.mxu3 %v1541_v30  ;;  %v1547_v30 = vld [vmem:[%s1834_s5 + $0x20] sm:$0xff] }
  0x49   :  { %871 = vmatpush.bf16.msrb.mxu1 %v1524_v27  ;;  %885 = vmatpush.bf16.msrb.mxu2 %v1531_v28  ;;  %v1550_v27 = vld [vmem:[%s1834_s5 + $0x38] sm:$0xff]  ;;  %v1549_v28 = vld [vmem:[%s1834_s5 + $0x30] sm:$0xff] }
  0x4a   :  { %859 = vmatpush.bf16.msra.mxu0 %v1515_v29  ;;  %v1548_v29 = vld [vmem:[%s1834_s5 + $0x28] sm:$0xff] }
  0x4c   :  { %897 = vmatpush.bf16.msra.mxu3 %v1540_v34 }
  0x4d   :  { %872 = vmatpush.bf16.msrb.mxu1 %v1523_v31  ;;  %886 = vmatpush.bf16.msrb.mxu2 %v1530_v32  ;;  %v1546_v31 = vld [vmem:[%s1834_s5 + $0x18] sm:$0xff] }
  0x4e   :  { %860 = vmatpush.bf16.msra.mxu0 %v1514_v33  ;;  %v1545_v33 = vld [vmem:[%s1834_s5 + $0x10] sm:$0xff] }
  0x50   :  { %898 = vmatpush.bf16.msra.mxu3 %v1539_v38  ;;  %v1543_v38 = vld [vmem:[%s1834_s5] sm:$0xff] }
  0x51   :  { %873 = vmatpush.bf16.msrb.mxu1 %v1522_v35  ;;  %887 = vmatpush.bf16.msrb.mxu2 %v1529_v36  ;;  %v1544_v35 = vld [vmem:[%s1834_s5 + $0x8] sm:$0xff] }
  0x52   :  { %861 = vmatpush.bf16.msra.mxu0 %v1513_v37 }
  0x54   :  { %899 = vmatpush.bf16.msra.mxu3 %v1538_v42  ;;  %v1554_v42 = vld [vmem:[%s1836_s7 + $0x18] sm:$0xff] }
  0x55   :  { %874 = vmatpush.bf16.msrb.mxu1 %v1521_v39  ;;  %888 = vmatpush.bf16.msrb.mxu2 %v1528_v40  ;;  %v1559_v40 = vld [vmem:[%s1833_s4] ss:$0 sm:$0xff] }
  0x56   :  { %862 = vmatpush.bf16.msra.mxu0 %v1512_v41 }
  0x58   :  { %900 = vmatpush.bf16.msra.mxu3 %v1537_v46 }
  0x59   :  { %875 = vmatpush.bf16.msrb.mxu1 %v1520_v43  ;;  %889 = vmatpush.bf16.msrb.mxu2 %v1527_v44 }
  0x5a   :  { %863 = vmatpush.bf16.msra.mxu0 %v1511_v45  ;;  %v1553_v45 = vld [vmem:[%s1836_s7 + $0x10] sm:$0xff] }
  0x5c   :  { %901 = vmatpush.bf16.msra.mxu3 %v1536_v50 }
  0x5d   :  { %876 = vmatpush.bf16.msrb.mxu1 %v1519_v47  ;;  %v1552_v47 = vld [vmem:[%s1836_s7 + $0x8] sm:$0xff] }
  0x60   :  { %902 = vmatpush.bf16.msra.mxu3 %v1535_v59 }
  0x95   :  { %v198_v53 = vpop.f32.mrf.mxu1 }
  0x96   :  { %v199_v54 = vadd.f32 %v198_v53, %v77_v49  ;;  %v185_v55 = vpop.f32.mrf.mxu3 }
  0x97   :  { %v186_v56 = vadd.f32 %v185_v55, %v76_v51  ;;  %v211_v57 = vpop.f32.mrf.mxu2 }
  0x98   :  { %v281_v58 = vpack.c.bf16 %v199_v54, %v199_v54  ;;  %v212_v60 = vadd.f32 %v211_v57, %v78_v52 }
  0x99   :  { %v280_v61 = vpack.c.bf16 %v186_v56, %v186_v56 }
  0x9a   :  { %825 = vmatmul.bf16.vlgmr.msra.gmra.mxu1 %v281_v58  ;;  %v282_v63 = vpack.c.bf16 %v212_v60, %v212_v60 }
  0x9b   :  { %812 = vmatmul.bf16.vlgmr.msrb.gmra.mxu0 %v280_v61  ;;  %1035 = vmatpush.bf16.msra.mxu1 %v1554_v42 }
  0x9c   :  { %v237_v62 = vpop.f32.mrf.mxu0  ;;  %838 = vmatmul.bf16.vlgmr.msra.gmra.mxu2 %v282_v63  ;;  %977 = vmatpush.bf16.msrb.mxu0 %v1550_v27 }
  0x9d   :  { %v200_v0 = vpop.f32.mrf.mxu1  ;;  %v238_v7 = vadd.f32 %v237_v62, %v80_v3 }
  0x9e   :  { %v187_v1 = vpop.f32.mrf.mxu3  ;;  %v1551_v0 = vld [vmem:[%s1836_s7] sm:$0xff] }
  0x9f   :  { %v213_v2 = vpop.f32.mrf.mxu2  ;;  %v284_v14 = vpack.c.bf16 %v238_v7, %v238_v7  ;;  %1036 = vmatpush.bf16.msra.mxu1 %v1553_v45  ;;  %v1555_v1 = vld [vmem:[%s1838_s9] sm:$0xff] }
  0xa0   :  { %978 = vmatpush.bf16.msrb.mxu0 %v1549_v28  ;;  %1068 = vmatpush.bf16.msra.mxu2 %v1555_v1  ;;  %v1560_v2 = vld [vmem:[%s1835_s6] ss:$0 sm:$0xff] }
  0xa1   :  { %v1561_v7 = vld [vmem:[%s1837_s8] ss:$0 sm:$0xff] }
  0xa3   :  { %1037 = vmatpush.bf16.msra.mxu1 %v1552_v47 }
  0xa4   :  { %v239_v5 = vpop.f32.mrf.mxu0  ;;  %979 = vmatpush.bf16.msrb.mxu0 %v1548_v29 }
  0xa5   :  { %v250_v9 = vpop.f32.mrf.mxu1 }
  0xa6   :  { %v251_v10 = vadd.f32 %v250_v9, %v81_v4  ;;  %v224_v11 = vpop.f32.mrf.mxu3 }
  0xa7   :  { %v225_v12 = vadd.f32 %v224_v11, %v79_v6  ;;  %v263_v13 = vpop.f32.mrf.mxu2  ;;  %1038 = vmatpush.bf16.msra.mxu1 %v1551_v0 }
  0xa8   :  { %v285_v15 = vpack.c.bf16 %v251_v10, %v251_v10  ;;  %v264_v16 = vadd.f32 %v263_v13, %v82_v8  ;;  %980 = vmatpush.bf16.msrb.mxu0 %v1547_v30 }
  0xa9   :  { %v283_v17 = vpack.c.bf16 %v225_v12, %v225_v12  ;;  %v1562_v12 = vld [vmem:[#allocation2] ss:$0 sm:$0xff] }
  0xaa   :  { %877 = vmatmul.bf16.vlgmr.msrb.gmra.mxu1 %v285_v15  ;;  %v286_v18 = vpack.c.bf16 %v264_v16, %v264_v16 }
  0xab   :  { %851 = vmatmul.bf16.vlgmr.msrb.gmra.mxu3 %v283_v17  ;;  %864 = vmatmul.bf16.vlgmr.msra.gmra.mxu0 %v284_v14 }
  0xac   :  { %890 = vmatmul.bf16.vlgmr.msrb.gmra.mxu2 %v286_v18  ;;  %981 = vmatpush.bf16.msrb.mxu0 %v1546_v31 }
  0xad   :  { %v252_v19 = vpop.f32.mrf.mxu1 }
  0xae   :  { %v226_v21 = vpop.f32.mrf.mxu3 }
  0xaf   :  { %v265_v22 = vpop.f32.mrf.mxu2 }
  0xb0   :  { %982 = vmatpush.bf16.msrb.mxu0 %v1545_v33 }
  0xb4   :  { %983 = vmatpush.bf16.msrb.mxu0 %v1544_v35 }
  0xb6   :  { %v276_v23 = vpop.f32.mrf.mxu3 }
  0xb7   :  { %v277_v24 = vadd.f32 %v276_v23, %v83_v20 }
  0xb8   :  { %984 = vmatpush.bf16.msrb.mxu0 %v1543_v38 }
  0xb9   :  { %v287_v25 = vpack.c.bf16 %v277_v24, %v277_v24 }
  0xbb   :  { %903 = vmatmul.bf16.vlgmr.msra.gmra.mxu3 %v287_v25 }
  0xbe   :  { %v278_v26 = vpop.f32.mrf.mxu3 }
 0x117   :  { %v826_v32 = vpop.f32.mrf.mxu1 }
 0x118   :  { %v813_v34 = vpop.f32.mrf.mxu0 }
 0x119   :  { %v814_v46 = vadd.f32 %v1559_v40, %v813_v34 }
 0x11b   :  { %v827_v48 = vadd.f32 %v826_v32, %v814_v46 }
 0x11f   :  { %v828_v36 = vpop.f32.mrf.mxu1  ;;  %v839_v37 = vpop.f32.mrf.mxu2 }
 0x120   :  { %v815_v39 = vpop.f32.mrf.mxu0  ;;  %v840_v51 = vadd.f32 %v839_v37, %v827_v48 }
 0x127   :  { %v878_v41 = vpop.f32.mrf.mxu1  ;;  %v841_v43 = vpop.f32.mrf.mxu2 }
 0x128   :  { %v865_v44 = vpop.f32.mrf.mxu0 }
 0x12e   :  { %v852_v49 = vpop.f32.mrf.mxu3 }
 0x12f   :  { %v880_v50 = vpop.f32.mrf.mxu1  ;;  %v891_v52 = vpop.f32.mrf.mxu2  ;;  %v853_v54 = vadd.f32 %v852_v49, %v840_v51 }
 0x130   :  { %v867_v53 = vpop.f32.mrf.mxu0 }
 0x131   :  { %v866_v55 = vadd.f32 %v865_v44, %v853_v54 }
 0x133   :  { %v879_v58 = vadd.f32 %v878_v41, %v866_v55 }
 0x135   :  { %v892_v59 = vadd.f32 %v891_v52, %v879_v58 }
 0x136   :  { %v854_v56 = vpop.f32.mrf.mxu3 }
 0x137   :  { %v893_v57 = vpop.f32.mrf.mxu2 }
 0x13e   :  { %v904_v60 = vpop.f32.mrf.mxu3 }
 0x13f   :  { %v905_v61 = vadd.f32 %v904_v60, %v892_v59 }
 0x141   :  { %v908_v62 = vpack.c.bf16 %v905_v61, %v905_v61 }
 0x143   :  { %985 = vmatmul.bf16.vlgmr.msrb.gmra.mxu0 %v908_v62 }
 0x146   :  { %v906_v63 = vpop.f32.mrf.mxu3 }
 0x1c0   :  { %v986_v3 = vpop.f32.mrf.mxu0 }
 0x1c1   :  { %v987_v4 = vadd.f32 %v1560_v2, %v986_v3 }
 0x1c3   :  { %v990_v5 = vpack.c.bf16 %v987_v4, %v987_v4 }
 0x1c5   :  { %1457 = vmatmul.msk.bf16.vlgmr.msra.gmra.mxu1 %vm1027_vm1, %v990_v5 }
 0x1c8   :  { %v988_v6 = vpop.f32.mrf.mxu0 }
 0x242   :  { %v1040_v8 = vpop.f32.mrf.mxu1 }
 0x243   :  { %v1041_v9 = vadd.f32 %v1561_v7, %v1040_v8 }
 0x245   :  { %v1044_v10 = vpack.c.bf16 %v1041_v9, %v1041_v9 }
 0x247   :  { %1462 = vmatmul.msk.bf16.vlgmr.msra.gmra.mxu2 %vm1057_vm2, %v1044_v10 }
 0x24a   :  { %v1042_v11 = vpop.f32.mrf.mxu1 }
 0x2ca   :  { %v1070_v13 = vpop.f32.mrf.mxu2 }
 0x2cb   :  { %v1071_v14 = vadd.f32 %v1562_v12, %v1070_v13 }
 0x2cd   :  { %1075 = vst.msk [vmem:[%s1840_s11] sm:$0xff] %vm1074_vm3, %v1071_v14 }
 0x2d2   :  { %v1072_v15 = vpop.f32.mrf.mxu2 }
 0x2d3   :  { %1080 = vsyncpa [#allocation4], 1 }

</bundles_post_ra>
